<compile_context>
chip_gen: v7x
topology: tpu7x:2x2x1
jax: 0.10.0
libtpu: 0.0.40
codegen_flags: <defaults>
</compile_context>

<pallas_src>
import functools

import jax
import jax.numpy as jnp
import numpy as np
from jax.experimental import pallas as pl
from jax.experimental.pallas import tpu as pltpu

LEAKY_SLOPE = 0.2


# ----------------------------------------------------------------------------
# Planning helpers (static, per graph / per model config).
# ----------------------------------------------------------------------------
def _round_up(v, m):
    return ((v + m - 1) // m) * m


def _pad_to(x, shape):
    return jnp.pad(x, [(0, s - d) for d, s in zip(x.shape, shape)])


def _vmem_budget_bytes():
    """VMEM cap: physical capacity minus headroom (generation aware)."""
    cap = 64 * 1024 * 1024  # conservative fallback == v7x per-TC VMEM
    try:
        cap = int(pltpu.get_tpu_info().vmem_capacity_bytes)
    except Exception:
        pass
    # ~56 MiB on v7x (64 MiB phys), ~112 MiB on v5e/v6e (128 MiB phys).
    return cap - max(8 * 1024 * 1024, cap // 8)


def _layer_vmem_bytes(tm, tk, f_pad, a_buffers):
    """Rough per-call VMEM footprint (pipelined BlockSpec buffers + scratch)."""
    return (a_buffers * tm * tk * 2          # A tiles (bf16, a_buffers deep)
            + 2 * tk * f_pad * 2             # X tiles (bf16, double buffered)
            + 2 * f_pad * f_pad * 2          # W (resident, still 2 buffers)
            + 2 * 8 * f_pad * 4              # b (f32, sublane-padded)
            + 2 * tm * f_pad * 4             # output tile (<= f32)
            + tm * f_pad * 4)                # f32 accumulator scratch


def make_plan(n_nodes, n_feat):
    """Static tiling plan shared by input preparation and the forward pass."""
    budget = _vmem_budget_bytes()
    f_pad = _round_up(max(n_feat, 128), 128)
    n_pad = _round_up(max(n_nodes, 128), 128)
    # Prefer 256-wide MXU tiles (v6e/v7x 2x256^2 MXU); 128 matches v5e and is
    # the fallback when N or the VMEM budget does not allow more.
    tile = 128
    for cand in (512, 256, 128):
        if n_pad % cand == 0 and _layer_vmem_bytes(cand, cand, f_pad, 3) + (1 << 20) <= budget:
            tile = cand
            break
    k_steps = n_pad // tile
    a_buffers = 3 if k_steps >= 3 else 2      # deeper pipeline only pays with >=3 k-steps
    return dict(n_pad=n_pad, f_pad=f_pad, tm=tile, tk=tile,
                a_buffers=a_buffers, vmem_limit=int(budget))


# ----------------------------------------------------------------------------
# Pallas kernel: one fused GCNConv layer.
#   grid = (T, N/tm, N/tk); k (columns of A_hat) is the reduction axis.
#   step:      acc[i] += A_hat[t, i, k] @ X[t, k]          (bf16 MXU, f32 acc)
#   finalize:  Y[t, i] = LeakyReLU(acc[i] @ W[t] + b[t])   ((A@X)@W == A@(X@W))
# ----------------------------------------------------------------------------
def _gcn_layer_kernel(a_ref, x_ref, w_ref, b_ref, y_ref, acc_ref, *, slope):
    k = pl.program_id(2)

    @pl.when(k == 0)
    def _():
        acc_ref[...] = jnp.zeros_like(acc_ref)

    acc_ref[...] += jnp.dot(a_ref[0], x_ref[0],
                            preferred_element_type=jnp.float32)

    @pl.when(k == pl.num_programs(2) - 1)
    def _():
        h = jnp.dot(acc_ref[...].astype(jnp.bfloat16), w_ref[0],
                    preferred_element_type=jnp.float32) + b_ref[0]
        y_ref[0] = jnp.where(h > 0, h, slope * h).astype(y_ref.dtype)


def _gcn_layer(a_p, x_p, w_p, b_p, *, plan, out_dtype):
    t, n_pad, _ = a_p.shape
    f_pad = x_p.shape[-1]
    tm, tk = plan["tm"], plan["tk"]
    grid = (t, n_pad // tm, n_pad // tk)

    a_kwargs = {}
    if plan["a_buffers"] > 2 and grid[2] >= plan["a_buffers"]:
        # Deeper pipeline only for the A stream (the sole O(N^2) DMA).
        a_kwargs["pipeline_mode"] = pl.Buffered(plan["a_buffers"])

    return pl.pallas_call(
        functools.partial(_gcn_layer_kernel, slope=LEAKY_SLOPE),
        out_shape=jax.ShapeDtypeStruct((t, n_pad, f_pad), out_dtype),
        grid_spec=pltpu.PrefetchScalarGridSpec(
            num_scalar_prefetch=0,
            grid=grid,
            in_specs=[
                pl.BlockSpec((1, tm, tk), lambda ti, i, k: (ti, i, k), **a_kwargs),
                pl.BlockSpec((1, tk, f_pad), lambda ti, i, k: (ti, k, 0)),
                # W / b constant along (i, k): stay resident, no re-DMA per k.
                pl.BlockSpec((1, f_pad, f_pad), lambda ti, i, k: (ti, 0, 0)),
                pl.BlockSpec((1, 1, f_pad), lambda ti, i, k: (ti, 0, 0)),
            ],
            out_specs=pl.BlockSpec((1, tm, f_pad), lambda ti, i, k: (ti, i, 0)),
            scratch_shapes=[pltpu.VMEM((tm, f_pad), jnp.float32)],
        ),
        compiler_params=pltpu.CompilerParams(
            dimension_semantics=("parallel", "parallel", "arbitrary"),
            vmem_limit_bytes=plan["vmem_limit"]),
    )(a_p, x_p, w_p, b_p)


def gcn_forward_padded(a_p, x_p, w1_p, b1_p, w2_p, b2_p, *, plan):
    """Padded forward: two fused GCNConv + LeakyReLU layers (dropout = identity)."""
    h = _gcn_layer(a_p, x_p, w1_p, b1_p, plan=plan, out_dtype=jnp.bfloat16)
    y = _gcn_layer(a_p, h, w2_p, b2_p, plan=plan, out_dtype=jnp.float32)
    return y


# ----------------------------------------------------------------------------
# One-time input preparation (hoisted out of the per-call path).
# ----------------------------------------------------------------------------
def build_normalized_adjacency(edge_index_list, num_nodes, n_pad):
    """A_hat = D^{-1/2}(A+I)D^{-1/2} per type, matching gcn_norm semantics
    (duplicate edges summed, self loops replaced by weight-1 loops, degree =
    incoming weight sum).  Returns (unpadded f32, padded bf16) versions; the
    padded bf16 array is what the kernel consumes (static per graph)."""
    dense, padded = [], []
    for ei in edge_index_list:
        src = np.asarray(ei[0])
        dst = np.asarray(ei[1])
        keep = src != dst                              # add_remaining_self_loops drops them
        adj = np.zeros((num_nodes, num_nodes), dtype=np.float32)
        np.add.at(adj, (dst[keep], src[keep]), 1.0)    # duplicate edges are summed
        adj += np.eye(num_nodes, dtype=np.float32)     # weight-1 self loop per node
        deg = adj.sum(axis=1)
        dinv = 1.0 / np.sqrt(np.maximum(deg, 1e-12))
        a_hat = (dinv[:, None] * adj) * dinv[None, :]
        dense.append(a_hat)
        pad = np.zeros((n_pad, n_pad), dtype=np.float32)
        pad[:num_nodes, :num_nodes] = a_hat
        padded.append(pad)
    return (jnp.asarray(np.stack(dense, 0), dtype=jnp.float32),
            jnp.asarray(np.stack(padded, 0), dtype=jnp.bfloat16))


def prepare_gcn_inputs(x, w1, b1, w2, b2, plan):
    """Pad + cast model inputs once (not per forward call)."""
    t = x.shape[0]
    n_pad, f_pad = plan["n_pad"], plan["f_pad"]
    x_p = _pad_to(x, (t, n_pad, f_pad)).astype(jnp.bfloat16)
    w1_p = _pad_to(w1, (t, f_pad, f_pad)).astype(jnp.bfloat16)
    w2_p = _pad_to(w2, (t, f_pad, f_pad)).astype(jnp.bfloat16)
    b1_p = _pad_to(b1, (t, 1, f_pad)).astype(jnp.float32)
    b2_p = _pad_to(b2, (t, 1, f_pad)).astype(jnp.float32)
    return x_p, w1_p, b1_p, w2_p, b2_p


def xavier_uniform(key, shape, gain=1.0):
    fan_in, fan_out = shape[-2], shape[-1]
    bound = gain * np.sqrt(6.0 / (fan_in + fan_out))
    return jax.random.uniform(key, shape, jnp.float32, -bound, bound)


# ----------------------------------------------------------------------------
# References.
# ----------------------------------------------------------------------------
def gcn_forward_ref_bf16(a_p, x_p, w1_p, b1_p, w2_p, b2_p):
    """Pure-JAX mirror of the kernel's bf16-MXU / f32-accumulate path."""
    def layer(a, x, w, b, out_dtype):
        agg = jnp.einsum('tnm,tmf->tnf', a, x, preferred_element_type=jnp.float32)
        h = jnp.einsum('tnf,tfg->tng', agg.astype(jnp.bfloat16), w,
                       preferred_element_type=jnp.float32) + b
        h = jnp.where(h > 0, h, LEAKY_SLOPE * h)
        return h.astype(out_dtype)

    h = layer(a_p, x_p, w1_p, b1_p, jnp.bfloat16)
    return layer(a_p, h, w2_p, b2_p, jnp.float32)


def gcn_forward_ref_f32(a_hat, x, w1, b1, w2, b2):
    """Full-f32 reference of the PyG GCNConv semantics (loose-tolerance check)."""
    def layer(a, x, w, b):
        h = jnp.einsum('tnm,tmf->tnf', a, jnp.einsum('tnf,tfg->tng', x, w)) + b
        return jnp.where(h > 0, h, LEAKY_SLOPE * h)

    h = layer(a_hat, x, w1, b1)
    return layer(a_hat, h, w2, b2)


# ----------------------------------------------------------------------------
# Demo / self-test.
# ----------------------------------------------------------------------------
if __name__ == "__main__":
    # config-equivalents (small, deterministic)
    T_SIZE = 2          # config.t_size
    N_NODES = 16        # config.node_size (per-type node count)
    N_FEAT = 32         # num_node_features == config.n_emb
    DROPOUT = 0.5       # unused at inference

    key = jax.random.PRNGKey(0)
    k_x, k_w1, k_w2, k_W, k_a, k_A = jax.random.split(key, 6)

    # node features x : (t_size, N, F)
    x = jax.random.normal(k_x, (T_SIZE, N_NODES, N_FEAT), jnp.float32)

    # per-type GCNConv parameters (glorot weights, zero-init bias like GCNConv)
    w1 = xavier_uniform(k_w1, (T_SIZE, N_FEAT, N_FEAT))
    w2 = xavier_uniform(k_w2, (T_SIZE, N_FEAT, N_FEAT))
    b1 = jnp.zeros((T_SIZE, 1, N_FEAT), jnp.float32)
    b2 = jnp.zeros((T_SIZE, 1, N_FEAT), jnp.float32)

    # module-level parameters defined in __init__ (not used by forward())
    W_param = xavier_uniform(k_W, (N_FEAT, N_FEAT), gain=1.414)
    a_param = xavier_uniform(k_a, (2 * N_FEAT, 1), gain=1.414)
    A_param = xavier_uniform(k_A, (2, 1), gain=1.414)
    del W_param, a_param, A_param

    # deterministic random edge_index per type, shape (2, E)
    rng = np.random.RandomState(0)
    edge_index = [rng.randint(0, N_NODES, size=(2, 3 * N_NODES)).astype(np.int64)
                  for _ in range(T_SIZE)]

    plan = make_plan(N_NODES, N_FEAT)
    a_hat_f32, a_hat_bf16_p = build_normalized_adjacency(edge_index, N_NODES,
                                                         n_pad=plan["n_pad"])
    padded_inputs = prepare_gcn_inputs(x, w1, b1, w2, b2, plan)

    fwd = jax.jit(functools.partial(gcn_forward_padded, plan=plan))
    y_pad = jax.block_until_ready(fwd(a_hat_bf16_p, *padded_inputs))
    y = np.asarray(y_pad[:, :N_NODES, :N_FEAT])

    # Tight check against a pure-JAX mirror of the kernel's bf16/f32 path.
    y_ref_bf16 = np.asarray(
        gcn_forward_ref_bf16(a_hat_bf16_p, *padded_inputs)[:, :N_NODES, :N_FEAT])
    np.testing.assert_allclose(y, y_ref_bf16, rtol=1e-3, atol=1e-3)

    # Looser check against the full-f32 PyG GCNConv semantics (bf16 operands
    # introduce ~0.5% relative drift — flagged in the review).
    y_ref_f32 = np.asarray(gcn_forward_ref_f32(a_hat_f32, x, w1, b1, w2, b2))
    np.testing.assert_allclose(y, y_ref_f32, rtol=5e-2, atol=5e-2)

    # The PyTorch forward returns a list Y of per-type outputs.
    Y = [y[i] for i in range(T_SIZE)]
    assert len(Y) == T_SIZE and Y[0].shape == (N_NODES, N_FEAT)

    print("KERNEL_OK")
</pallas_src>

<mosaic_0001>
module attributes {stable_mosaic.version = 11 : i64} {
  func.func @_gcn_layer_kernel(%arg0: i32, %arg1: i32, %arg2: i32, %arg3: memref<1x128x128xbf16, #tpu.memory_space<vmem>>, %arg4: memref<1x128x128xbf16, #tpu.memory_space<vmem>>, %arg5: memref<1x128x128xbf16, #tpu.memory_space<vmem>>, %arg6: memref<1x1x128xf32, #tpu.memory_space<vmem>>, %arg7: memref<1x128x128xbf16, #tpu.memory_space<vmem>>, %arg8: memref<128x128xf32, #tpu.memory_space<vmem>>) attributes {dimension_semantics = [#tpu.dimension_semantics<parallel>, #tpu.dimension_semantics<parallel>, #tpu.dimension_semantics<arbitrary>], iteration_bounds = array<i64: 2, 1, 1>, scalar_prefetch = 0 : i64, scratch_operands = 1 : i64, tpu.core_type = #tpu.core_type<tc>, window_params = [{transform_indices = @transform_0, window_bounds = array<i64: 1, 128, 128>}, {transform_indices = @transform_1, window_bounds = array<i64: 1, 128, 128>}, {transform_indices = @transform_2, window_bounds = array<i64: 1, 128, 128>}, {transform_indices = @transform_3, window_bounds = array<i64: 1, 1, 128>}, {transform_indices = @transform_4, window_bounds = array<i64: 1, 128, 128>}]} {
    %c0_i32 = arith.constant 0 : i32
    %0 = arith.cmpi eq, %arg2, %c0_i32 : i32
    %1 = arith.extui %0 : i1 to i32
    %c0_i32_0 = arith.constant 0 : i32
    %2 = arith.cmpi ne, %1, %c0_i32_0 : i32
    scf.if %2 {
      %cst_12 = arith.constant 0.000000e+00 : f32
      %14 = vector.broadcast %cst_12 : f32 to vector<128x128xf32>
      %c0_13 = arith.constant 0 : index
      %c0_14 = arith.constant 0 : index
      %15 = vector.load %arg8[%c0_13, %c0_14] : memref<128x128xf32, #tpu.memory_space<vmem>>, vector<128x128xf32>
      tpu.vector_store %arg8[%c0_13, %c0_14], %14 {strides = array<i32>} : memref<128x128xf32, #tpu.memory_space<vmem>>, vector<128x128xf32>,
    } else {
    }
    %c0 = arith.constant 0 : index
    %c0_1 = arith.constant 0 : index
    %3 = vector.load %arg8[%c0, %c0_1] : memref<128x128xf32, #tpu.memory_space<vmem>>, vector<128x128xf32>
    %c0_2 = arith.constant 0 : index
    %c0_3 = arith.constant 0 : index
    %c0_4 = arith.constant 0 : index
    %4 = vector.load %arg3[%c0_2, %c0_3, %c0_4] : memref<1x128x128xbf16, #tpu.memory_space<vmem>>, vector<1x128x128xbf16>
    %5 = vector.shape_cast %4 : vector<1x128x128xbf16> to vector<128x128xbf16>
    %c0_5 = arith.constant 0 : index
    %c0_6 = arith.constant 0 : index
    %c0_7 = arith.constant 0 : index
    %6 = vector.load %arg4[%c0_5, %c0_6, %c0_7] : memref<1x128x128xbf16, #tpu.memory_space<vmem>>, vector<1x128x128xbf16>
    %7 = vector.shape_cast %6 : vector<1x128x128xbf16> to vector<128x128xbf16>
    %cst = arith.constant dense<0.000000e+00> : vector<128x128xf32>
    %8 = tpu.matmul %5, %7, %cst {dimension_numbers = #tpu.dot_dimension_numbers<[1], [0], [0], [1], [0, 0, 1, 1], [], []>} : vector<128x128xbf16>, vector<128x128xbf16>, vector<128x128xf32> -> vector<128x128xf32>
    %9 = arith.addf %3, %8 : vector<128x128xf32>
    %c0_8 = arith.constant 0 : index
    %c0_9 = arith.constant 0 : index
    %10 = vector.load %arg8[%c0_8, %c0_9] : memref<128x128xf32, #tpu.memory_space<vmem>>, vector<128x128xf32>
    tpu.vector_store %arg8[%c0_8, %c0_9], %9 {strides = array<i32>} : memref<128x128xf32, #tpu.memory_space<vmem>>, vector<128x128xf32>,
    %c0_i32_10 = arith.constant 0 : i32
    %11 = arith.cmpi eq, %arg2, %c0_i32_10 : i32
    %12 = arith.extui %11 : i1 to i32
    %c0_i32_11 = arith.constant 0 : i32
    %13 = arith.cmpi ne, %12, %c0_i32_11 : i32
    scf.if %13 {
      %c0_12 = arith.constant 0 : index
      %c0_13 = arith.constant 0 : index
      %14 = vector.load %arg8[%c0_12, %c0_13] : memref<128x128xf32, #tpu.memory_space<vmem>>, vector<128x128xf32>
      %15 = arith.truncf %14 : vector<128x128xf32> to vector<128x128xbf16>
      %c0_14 = arith.constant 0 : index
      %c0_15 = arith.constant 0 : index
      %c0_16 = arith.constant 0 : index
      %16 = vector.load %arg5[%c0_14, %c0_15, %c0_16] : memref<1x128x128xbf16, #tpu.memory_space<vmem>>, vector<1x128x128xbf16>
      %17 = vector.shape_cast %16 : vector<1x128x128xbf16> to vector<128x128xbf16>
      %cst_17 = arith.constant dense<0.000000e+00> : vector<128x128xf32>
      %18 = tpu.matmul %15, %17, %cst_17 {dimension_numbers = #tpu.dot_dimension_numbers<[1], [0], [0], [1], [0, 0, 1, 1], [], []>} : vector<128x128xbf16>, vector<128x128xbf16>, vector<128x128xf32> -> vector<128x128xf32>
      %c0_18 = arith.constant 0 : index
      %c0_19 = arith.constant 0 : index
      %c0_20 = arith.constant 0 : index
      %19 = vector.load %arg6[%c0_18, %c0_19, %c0_20] : memref<1x1x128xf32, #tpu.memory_space<vmem>>, vector<1x1x128xf32>
      %20 = vector.shape_cast %19 : vector<1x1x128xf32> to vector<1x128xf32>
      %21 = vector.broadcast %20 : vector<1x128xf32> to vector<128x128xf32>
      %22 = arith.addf %18, %21 : vector<128x128xf32>
      %cst_21 = arith.constant 0.000000e+00 : f32
      %23 = vector.broadcast %cst_21 : f32 to vector<128x128xf32>
      %24 = arith.cmpf ogt, %22, %23 : vector<128x128xf32>
      %cst_22 = arith.constant 2.000000e-01 : f32
      %25 = vector.broadcast %cst_22 : f32 to vector<128x128xf32>
      %26 = arith.mulf %25, %22 : vector<128x128xf32>
      %27 = arith.select %24, %22, %26 : vector<128x128xi1>, vector<128x128xf32>
      %28 = arith.truncf %27 : vector<128x128xf32> to vector<128x128xbf16>
      %c0_23 = arith.constant 0 : index
      %c0_24 = arith.constant 0 : index
      %c0_25 = arith.constant 0 : index
      %29 = vector.load %arg7[%c0_23, %c0_24, %c0_25] : memref<1x128x128xbf16, #tpu.memory_space<vmem>>, vector<1x128x128xbf16>
      %30 = vector.shape_cast %29 : vector<1x128x128xbf16> to vector<128x128xbf16>
      %31 = vector.shape_cast %28 : vector<128x128xbf16> to vector<1x128x128xbf16>
      tpu.vector_store %arg7[%c0_23, %c0_24, %c0_25], %31 {strides = array<i32>} : memref<1x128x128xbf16, #tpu.memory_space<vmem>>, vector<1x128x128xbf16>,
    } else {
    }
    return
  }
  func.func @transform_0(%arg0: i32, %arg1: i32, %arg2: i32) -> (i32, i32, i32) {
    %c0_i32 = arith.constant 0 : i32
    return %arg0, %arg1, %arg2 : i32, i32, i32
  }
  func.func @transform_1(%arg0: i32, %arg1: i32, %arg2: i32) -> (i32, i32, i32) {
    %c0_i32 = arith.constant 0 : i32
    %c0_i32_0 = arith.constant 0 : i32
    return %arg0, %arg2, %c0_i32 : i32, i32, i32
  }
  func.func @transform_2(%arg0: i32, %arg1: i32, %arg2: i32) -> (i32, i32, i32) {
    %c0_i32 = arith.constant 0 : i32
    %c0_i32_0 = arith.constant 0 : i32
    %c0_i32_1 = arith.constant 0 : i32
    return %arg0, %c0_i32, %c0_i32_0 : i32, i32, i32
  }
  func.func @transform_3(%arg0: i32, %arg1: i32, %arg2: i32) -> (i32, i32, i32) {
    %c0_i32 = arith.constant 0 : i32
    %c0_i32_0 = arith.constant 0 : i32
    %c0_i32_1 = arith.constant 0 : i32
    return %arg0, %c0_i32, %c0_i32_0 : i32, i32, i32
  }
  func.func @transform_4(%arg0: i32, %arg1: i32, %arg2: i32) -> (i32, i32, i32) {
    %c0_i32 = arith.constant 0 : i32
    %c0_i32_0 = arith.constant 0 : i32
    return %arg0, %arg1, %c0_i32 : i32, i32, i32
  }
}

module attributes {stable_mosaic.version = 11 : i64} {
  func.func @_gcn_layer_kernel(%arg0: i32, %arg1: i32, %arg2: i32, %arg3: memref<1x128x128xbf16, #tpu.memory_space<vmem>>, %arg4: memref<1x128x128xbf16, #tpu.memory_space<vmem>>, %arg5: memref<1x128x128xbf16, #tpu.memory_space<vmem>>, %arg6: memref<1x1x128xf32, #tpu.memory_space<vmem>>, %arg7: memref<1x128x128xf32, #tpu.memory_space<vmem>>, %arg8: memref<128x128xf32, #tpu.memory_space<vmem>>) attributes {dimension_semantics = [#tpu.dimension_semantics<parallel>, #tpu.dimension_semantics<parallel>, #tpu.dimension_semantics<arbitrary>], iteration_bounds = array<i64: 2, 1, 1>, scalar_prefetch = 0 : i64, scratch_operands = 1 : i64, tpu.core_type = #tpu.core_type<tc>, window_params = [{transform_indices = @transform_0, window_bounds = array<i64: 1, 128, 128>}, {transform_indices = @transform_1, window_bounds = array<i64: 1, 128, 128>}, {transform_indices = @transform_2, window_bounds = array<i64: 1, 128, 128>}, {transform_indices = @transform_3, window_bounds = array<i64: 1, 1, 128>}, {transform_indices = @transform_4, window_bounds = array<i64: 1, 128, 128>}]} {
    %c0_i32 = arith.constant 0 : i32
    %0 = arith.cmpi eq, %arg2, %c0_i32 : i32
    %1 = arith.extui %0 : i1 to i32
    %c0_i32_0 = arith.constant 0 : i32
    %2 = arith.cmpi ne, %1, %c0_i32_0 : i32
    scf.if %2 {
      %cst_12 = arith.constant 0.000000e+00 : f32
      %14 = vector.broadcast %cst_12 : f32 to vector<128x128xf32>
      %c0_13 = arith.constant 0 : index
      %c0_14 = arith.constant 0 : index
      %15 = vector.load %arg8[%c0_13, %c0_14] : memref<128x128xf32, #tpu.memory_space<vmem>>, vector<128x128xf32>
      tpu.vector_store %arg8[%c0_13, %c0_14], %14 {strides = array<i32>} : memref<128x128xf32, #tpu.memory_space<vmem>>, vector<128x128xf32>,
    } else {
    }
    %c0 = arith.constant 0 : index
    %c0_1 = arith.constant 0 : index
    %3 = vector.load %arg8[%c0, %c0_1] : memref<128x128xf32, #tpu.memory_space<vmem>>, vector<128x128xf32>
    %c0_2 = arith.constant 0 : index
    %c0_3 = arith.constant 0 : index
    %c0_4 = arith.constant 0 : index
    %4 = vector.load %arg3[%c0_2, %c0_3, %c0_4] : memref<1x128x128xbf16, #tpu.memory_space<vmem>>, vector<1x128x128xbf16>
    %5 = vector.shape_cast %4 : vector<1x128x128xbf16> to vector<128x128xbf16>
    %c0_5 = arith.constant 0 : index
    %c0_6 = arith.constant 0 : index
    %c0_7 = arith.constant 0 : index
    %6 = vector.load %arg4[%c0_5, %c0_6, %c0_7] : memref<1x128x128xbf16, #tpu.memory_space<vmem>>, vector<1x128x128xbf16>
    %7 = vector.shape_cast %6 : vector<1x128x128xbf16> to vector<128x128xbf16>
    %cst = arith.constant dense<0.000000e+00> : vector<128x128xf32>
    %8 = tpu.matmul %5, %7, %cst {dimension_numbers = #tpu.dot_dimension_numbers<[1], [0], [0], [1], [0, 0, 1, 1], [], []>} : vector<128x128xbf16>, vector<128x128xbf16>, vector<128x128xf32> -> vector<128x128xf32>
    %9 = arith.addf %3, %8 : vector<128x128xf32>
    %c0_8 = arith.constant 0 : index
    %c0_9 = arith.constant 0 : index
    %10 = vector.load %arg8[%c0_8, %c0_9] : memref<128x128xf32, #tpu.memory_space<vmem>>, vector<128x128xf32>
    tpu.vector_store %arg8[%c0_8, %c0_9], %9 {strides = array<i32>} : memref<128x128xf32, #tpu.memory_space<vmem>>, vector<128x128xf32>,
    %c0_i32_10 = arith.constant 0 : i32
    %11 = arith.cmpi eq, %arg2, %c0_i32_10 : i32
    %12 = arith.extui %11 : i1 to i32
    %c0_i32_11 = arith.constant 0 : i32
    %13 = arith.cmpi ne, %12, %c0_i32_11 : i32
    scf.if %13 {
      %c0_12 = arith.constant 0 : index
      %c0_13 = arith.constant 0 : index
      %14 = vector.load %arg8[%c0_12, %c0_13] : memref<128x128xf32, #tpu.memory_space<vmem>>, vector<128x128xf32>
      %15 = arith.truncf %14 : vector<128x128xf32> to vector<128x128xbf16>
      %c0_14 = arith.constant 0 : index
      %c0_15 = arith.constant 0 : index
      %c0_16 = arith.constant 0 : index
      %16 = vector.load %arg5[%c0_14, %c0_15, %c0_16] : memref<1x128x128xbf16, #tpu.memory_space<vmem>>, vector<1x128x128xbf16>
      %17 = vector.shape_cast %16 : vector<1x128x128xbf16> to vector<128x128xbf16>
      %cst_17 = arith.constant dense<0.000000e+00> : vector<128x128xf32>
      %18 = tpu.matmul %15, %17, %cst_17 {dimension_numbers = #tpu.dot_dimension_numbers<[1], [0], [0], [1], [0, 0, 1, 1], [], []>} : vector<128x128xbf16>, vector<128x128xbf16>, vector<128x128xf32> -> vector<128x128xf32>
      %c0_18 = arith.constant 0 : index
      %c0_19 = arith.constant 0 : index
      %c0_20 = arith.constant 0 : index
      %19 = vector.load %arg6[%c0_18, %c0_19, %c0_20] : memref<1x1x128xf32, #tpu.memory_space<vmem>>, vector<1x1x128xf32>
      %20 = vector.shape_cast %19 : vector<1x1x128xf32> to vector<1x128xf32>
      %21 = vector.broadcast %20 : vector<1x128xf32> to vector<128x128xf32>
      %22 = arith.addf %18, %21 : vector<128x128xf32>
      %cst_21 = arith.constant 0.000000e+00 : f32
      %23 = vector.broadcast %cst_21 : f32 to vector<128x128xf32>
      %24 = arith.cmpf ogt, %22, %23 : vector<128x128xf32>
      %cst_22 = arith.constant 2.000000e-01 : f32
      %25 = vector.broadcast %cst_22 : f32 to vector<128x128xf32>
      %26 = arith.mulf %25, %22 : vector<128x128xf32>
      %27 = arith.select %24, %22, %26 : vector<128x128xi1>, vector<128x128xf32>
      %c0_23 = arith.constant 0 : index
      %c0_24 = arith.constant 0 : index
      %c0_25 = arith.constant 0 : index
      %28 = vector.load %arg7[%c0_23, %c0_24, %c0_25] : memref<1x128x128xf32, #tpu.memory_space<vmem>>, vector<1x128x128xf32>
      %29 = vector.shape_cast %28 : vector<1x128x128xf32> to vector<128x128xf32>
      %30 = vector.shape_cast %27 : vector<128x128xf32> to vector<1x128x128xf32>
      tpu.vector_store %arg7[%c0_23, %c0_24, %c0_25], %30 {strides = array<i32>} : memref<1x128x128xf32, #tpu.memory_space<vmem>>, vector<1x128x128xf32>,
    } else {
    }
    return
  }
  func.func @transform_0(%arg0: i32, %arg1: i32, %arg2: i32) -> (i32, i32, i32) {
    %c0_i32 = arith.constant 0 : i32
    return %arg0, %arg1, %arg2 : i32, i32, i32
  }
  func.func @transform_1(%arg0: i32, %arg1: i32, %arg2: i32) -> (i32, i32, i32) {
    %c0_i32 = arith.constant 0 : i32
    %c0_i32_0 = arith.constant 0 : i32
    return %arg0, %arg2, %c0_i32 : i32, i32, i32
  }
  func.func @transform_2(%arg0: i32, %arg1: i32, %arg2: i32) -> (i32, i32, i32) {
    %c0_i32 = arith.constant 0 : i32
    %c0_i32_0 = arith.constant 0 : i32
    %c0_i32_1 = arith.constant 0 : i32
    return %arg0, %c0_i32, %c0_i32_0 : i32, i32, i32
  }
  func.func @transform_3(%arg0: i32, %arg1: i32, %arg2: i32) -> (i32, i32, i32) {
    %c0_i32 = arith.constant 0 : i32
    %c0_i32_0 = arith.constant 0 : i32
    %c0_i32_1 = arith.constant 0 : i32
    return %arg0, %c0_i32, %c0_i32_0 : i32, i32, i32
  }
  func.func @transform_4(%arg0: i32, %arg1: i32, %arg2: i32) -> (i32, i32, i32) {
    %c0_i32 = arith.constant 0 : i32
    %c0_i32_0 = arith.constant 0 : i32
    return %arg0, %arg1, %c0_i32 : i32, i32, i32
  }
}

</mosaic_0001>

<bundles_post_ra>
// kernel: gcn_forward_padded.3
= control target key start
LH: loop header
LB: loop body
LE: loop exit
PB: predicated region body
PF: predicated region fallthrough
CT: control target
= control target key end

     0   :  { %9 = vsyncpa [#allocation4], 0  ;;  %s1538_s0 = inlined_call_operand.vmem [shape: bf16[2,128,128], index: 0, kind: input, shape index: {}]   ;;  %s1539_s1 = inlined_call_operand.vmem [shape: bf16[2,128,128], index: 1, kind: input, shape index: {}]   ;;  %s1540_s2 = inlined_call_operand.vmem [shape: bf16[2,128,128], index: 2, kind: input, shape index: {}]   ;;  %s1541_s3 = inlined_call_operand.vmem [shape: f32[2,1,128], index: 3, kind: input, shape index: {}]   ;;  %s1542_s4 = inlined_call_operand.hbm [shape: f32[2,128,128], index: 4, kind: output, shape index: {}]  }
   0x1   :  { %11 = vsyncpa [#allocation4 + $0x1], 0  ;;  %s1339_s15 = smov 0   ;;  %s1341_s16 = smov 0  }
   0x2   :  { %s1343_s17 = smov 0   ;;  %s1345_s18 = smov 0  }
   0x3   :  { %s1347_s19 = smov 0   ;;  %s1349_s20 = smov 0  }
   0x4 LB: > { %s1008_s21 = sadd.s32 4294967295, %s1309_s20   ;;  %s1009_s22 = sadd.s32 4294967294, %s1309_s20   ;;  %s1309_s20 = sphi %s1349_s20, %s17_s20   ;;  %s1305_s19 = sphi %s1347_s19, %s1549_s19   ;;  %s1301_s18 = sphi %s1345_s18, %s1548_s18   ;;  %s1297_s17 = sphi %s1343_s17, %s1547_s17   ;;  %s1293_s16 = sphi %s1341_s16, %s1546_s16   ;;  %s1289_s15 = sphi %s1339_s15, %s1545_s15  }
   0x5   : > { %s36_s23 = sadd.s32 1, %s1305_s19  ;;  %s155_s24 = sadd.s32 1, %s1297_s17 }
   0x6   : > { %p38_p0 = scmp.ge.s32.totalorder %s36_s23, 2  ;;  %p165_p1 = scmp.ne.s32.totalorder %s1297_s17, %s1293_s16 }
   0x7   : > { %p166_p2 = scmp.eq.s32.totalorder %s1008_s21, 1  ;;  %p171_p3 = scmp.ne.s32.totalorder %s1293_s16, %s1289_s15 }
   0x8   : > { %s1551_s23 = smov (%p38_p0, %s36_s23), 0  ;;  %p172_p5 = scmp.eq.s32.totalorder %s1009_s22, 1 }
   0x9   : > { %p1379_p4 = por %p166_p2, %p165_p1  ;;  %s150_s26 = ssub.s32 %s1305_s19, %s1551_s23 }
   0xa   : > { %p1012_p6 = scmp.ge.s32.totalorder %s1309_s20, 1  ;;  %p153_p7 = scmp.eq.s32.totalorder %s150_s26, 0 }
   0xb   : > { %p1386_p8 = por %p172_p5, %p171_p3  ;;  %p233_p9 = scmp.lt.s32.totalorder %s1309_s20, 3 }
   0xc   : > { %s1392_s28 = scalar_select %p153_p7, %s1297_s17, %s155_s24  }
   0xd   : > { %p234_p10 = pnand %p1012_p6, %p233_p9 }
   0xe   : > { %p284_p11 = scmp.lt.s32.totalorder (!%p234_p10), %s1301_s18, 1  ;;  %s280_s24 = sand.u32 (!%p234_p10), 1, %s1293_s16  }
   0xf   : > { %237 = sbr.rel (%p234_p10) target bundleno = 536 (0x218), region = 36  ;;  %s1013_s26 = sshll.u32 (!%p234_p10), %s280_s24, 7 }
  0x10   : > { %s1492_s8 = scalar_lea.sflag (!%p234_p10), [#allocation4], %s280_s24 }
  0x16   : > { %s1396_s29 = scalar_select %p284_p11, %s1301_s18, 1 }
  0x18   : > { %s1050_s30 = sshll.u32 %s1396_s29, 6  ;;  %s313_s22 = scalar_lea.vmem %s1541_s3, %s1396_s29 }
  0x19   : > { %s1402_s7 = scalar_lea.vmem %s1539_s1, %s1050_s30  ;;  %s1410_s10 = scalar_lea.vmem %s1538_s0, %s1050_s30  ;;  %v1443_v48 = vld [vmem:[%s313_s22] ss:$0 sm:$0xff] }
  0x1a   : > { %v1207_v0 = vld [vmem:[%s1402_s7] sm:$0xff]   ;;  %v1208_v1 = vld [vmem:[%s1402_s7 + $0x8] sm:$0xff]   ;;  %v1209_v2 = vld [vmem:[%s1402_s7 + $0x10] sm:$0xff]   ;;  %s1418_s13 = scalar_lea.vmem %s1540_s2, %s1050_s30  ;;  %s1451_s29 = scalar_lea.vmem [#allocation3], %s1013_s26 }
  0x1b   : > { %1086 = vmatprep.subr.bf16.mxu0 %v1207_v0  ;;  %v1210_v3 = vld [vmem:[%s1402_s7 + $0x18] sm:$0xff]   ;;  %v1215_v4 = vld [vmem:[%s1410_s10] sm:$0xff]   ;;  %v1212_v6 = vld [vmem:[%s1402_s7 + $0x28] sm:$0xff]   ;;  %s1053_s30 = sshll.u32 %s1301_s18, 11  ;;  %s884_s5 = sshll.u32 %s1451_s29, 4  ;;  %s1485_s5 = int_to_ptr.vmem [resolvable:$true] %s884_s5 }
  0x1c   : > { %1087 = vmatpush3.bf16.msra.mxu0 %v1207_v0  ;;  %1102 = vmatprep.mubr.bf16.mxu0 %v1215_v4  ;;  %v1211_v5 = vld [vmem:[%s1402_s7 + $0x20] sm:$0xff]   ;;  %v1224_v8 = vld [vmem:[%s1418_s13 + $0x8] sm:$0xff]   ;;  %v1213_v9 = vld [vmem:[%s1402_s7 + $0x30] sm:$0xff]   ;;  %s1483_s18 = scalar_lea.hbm %s1542_s4, %s1053_s30  ;;  %s1231_s9 = scalar_lea.vmem %s1485_s5, 2048 }
  0x1d   : > { %1088 = vmatprep.subr.bf16.mxu0 %v1208_v1  ;;  %v1223_v7 = vld [vmem:[%s1418_s13] sm:$0xff]   ;;  %v1225_v10 = vld [vmem:[%s1418_s13 + $0x10] sm:$0xff]   ;;  %v1214_v11 = vld [vmem:[%s1402_s7 + $0x38] sm:$0xff]   ;;  %p1232_p12 = scmp.ne.s32.totalorder %s1485_s5, %s1231_s9 }
  0x1e   : > { %1118 = vmatprep.subr.bf16.mxu1 %v1223_v7  ;;  %v1226_v12 = vld [vmem:[%s1418_s13 + $0x18] sm:$0xff]   ;;  %v1227_v13 = vld [vmem:[%s1418_s13 + $0x20] sm:$0xff]   ;;  %v1216_v14 = vld [vmem:[%s1410_s10 + $0x8] sm:$0xff]  }
  0x1f   : > { %1119 = vmatpush3.bf16.msra.mxu1 %v1223_v7  ;;  %v1217_v15 = vld [vmem:[%s1410_s10 + $0x10] sm:$0xff]   ;;  %v1228_v16 = vld [vmem:[%s1418_s13 + $0x28] sm:$0xff]   ;;  %v1218_v18 = vld [vmem:[%s1410_s10 + $0x18] sm:$0xff]   ;;  %p1233_p13 = pnand %p1232_p12, %p1379_p4 }
  0x20   : > { %1089 = vmatpush3.bf16.msra.mxu0 %v1208_v1  ;;  %1120 = vmatprep.subr.bf16.mxu1 %v1224_v8  ;;  %v1229_v17 = vld [vmem:[%s1418_s13 + $0x30] sm:$0xff]   ;;  %v1219_v19 = vld [vmem:[%s1410_s10 + $0x20] sm:$0xff]   ;;  %v1220_v20 = vld [vmem:[%s1410_s10 + $0x28] sm:$0xff]  }
  0x21   : > { %1090 = vmatprep.subr.bf16.mxu0 %v1209_v2  ;;  %v1221_v21 = vld [vmem:[%s1410_s10 + $0x30] sm:$0xff]   ;;  %v1222_v22 = vld [vmem:[%s1410_s10 + $0x38] sm:$0xff]   ;;  %p1234_p0 = pneg %p1233_p13  ;;  %s1311_s10 = smov [#allocation3]  }
  0x22   : > { %v1230_v23 = vld [vmem:[%s1418_s13 + $0x38] sm:$0xff]   ;;  %s1235_s11 = sshll.u32 %s1311_s10, 4  ;;  %s1236_s11 = int_to_ptr.vmem [resolvable:$false] %s1235_s11 }
  0x23   : > { %1121 = vmatpush3.bf16.msra.mxu1 %v1224_v8  ;;  %s1237_s12 = scalar_lea.vmem %s1236_s11, 4096  ;;  %p1238_p1 = scmp.lt.s32.totalorder %s1485_s5, %s1236_s11 }
  0x24   : > { %1091 = vmatpush3.bf16.msra.mxu0 %v1209_v2  ;;  %1122 = vmatprep.subr.bf16.mxu1 %v1225_v10  ;;  %p1239_p2 = scmp.lt.s32.totalorder %s1237_s12, %s1231_s9 }
  0x25   : > { %1092 = vmatprep.subr.bf16.mxu0 %v1210_v3 }
  0x26   : > { %p1240_p3 = por %p1239_p2, %p1238_p1 }
  0x27   : > { %1123 = vmatpush3.bf16.msra.mxu1 %v1225_v10 }
  0x28   : > { %1093 = vmatpush3.bf16.msra.mxu0 %v1210_v3  ;;  %1124 = vmatprep.subr.bf16.mxu1 %v1226_v12  ;;  %p1241_p5 = pnand %p1240_p3, %p1234_p0 }
  0x29   : > { %1094 = vmatprep.subr.bf16.mxu0 %v1211_v5 }
  0x2b   : > { %1125 = vmatpush3.bf16.msra.mxu1 %v1226_v12 }
  0x2c   : > { %1095 = vmatpush3.bf16.msra.mxu0 %v1211_v5  ;;  %1126 = vmatprep.subr.bf16.mxu1 %v1227_v13 }
  0x2d   : > { %1096 = vmatprep.subr.bf16.mxu0 %v1212_v6 }
  0x2f   : > { %1127 = vmatpush3.bf16.msra.mxu1 %v1227_v13 }
  0x30   : > { %1097 = vmatpush3.bf16.msra.mxu0 %v1212_v6  ;;  %1128 = vmatprep.subr.bf16.mxu1 %v1228_v16 }
  0x31   : > { %1098 = vmatprep.subr.bf16.mxu0 %v1213_v9 }
  0x33   : > { %1129 = vmatpush3.bf16.msra.mxu1 %v1228_v16 }
  0x34   : > { %1099 = vmatpush3.bf16.msra.mxu0 %v1213_v9  ;;  %1130 = vmatprep.subr.bf16.mxu1 %v1229_v17 }
  0x35   : > { %1100 = vmatprep.subr.bf16.mxu0 %v1214_v11 }
  0x37   : > { %1131 = vmatpush3.bf16.msra.mxu1 %v1229_v17 }
  0x38   : > { %1101 = vmatpush3.bf16.msra.mxu0 %v1214_v11  ;;  %1132 = vmatprep.subr.bf16.mxu1 %v1230_v23 }
  0x3b   : > { %1103 = vmatmul.mubr.bf16.vlgmr.msra.gmra.mrb[0].mxu0 %v1216_v14  ;;  %1133 = vmatpush3.bf16.msra.mxu1 %v1230_v23 }
  0x3c   : > { %1106 = vmatprep.mubr.bf16.mxu0 %v1217_v15 }
  0x43   : > { %1107 = vmatmul.mubr.bf16.gmra.mrb[4].mxu0 %v1218_v18 }
  0x44   : > { %1110 = vmatprep.mubr.bf16.mxu0 %v1219_v19 }
  0x4b   : > { %1111 = vmatmul.mubr.bf16.gmra.mrb[8].mxu0 %v1220_v20 }
  0x4c   : > { %1114 = vmatprep.mubr.bf16.mxu0 %v1221_v21 }
  0x53   : > { %1115 = vmatmul.mubr.bf16.gmra.mrb[12].mxu0 %v1222_v22 }
 0x10e   : > { %v1104_v24 = vpop.f32.mrb[0].mxu0 }
 0x10f   : > { %v514_v25 = vpop.f32.mrb[1].mxu0 }
 0x110   : > { %v1105_v26 = vpop.f32.mrb[2].mxu0 }
 0x111   : > { %v629_v27 = vpack.c.bf16 %v1105_v26, %v1104_v24  ;;  %v517_v28 = vpop.f32.mrb[3].mxu0 }
 0x112   : > { %v628_v29 = vpack.c.bf16 %v517_v28, %v514_v25 }
 0x114   : > { %1134 = vmatprep.mubr.bf16.mxu1 %v628_v29 }
 0x115   : > { %1135 = vmatmul.mubr.bf16.vlgmr.msra.gmra.mrb[0].mxu1 %v629_v27 }
 0x116   : > { %v1108_v30 = vpop.f32.mrb[4].mxu0 }
 0x117   : > { %v530_v31 = vpop.f32.mrb[5].mxu0 }
 0x118   : > { %v1109_v32 = vpop.f32.mrb[6].mxu0 }
 0x119   : > { %v631_v33 = vpack.c.bf16 %v1109_v32, %v1108_v30  ;;  %v533_v34 = vpop.f32.mrb[7].mxu0 }
 0x11a   : > { %v630_v35 = vpack.c.bf16 %v533_v34, %v530_v31 }
 0x11c   : > { %1138 = vmatprep.mubr.bf16.mxu1 %v630_v35 }
 0x11d   : > { %1139 = vmatmul.mubr.bf16.gmra.mrb[4].mxu1 %v631_v33 }
 0x11e   : > { %v1112_v36 = vpop.f32.mrb[8].mxu0 }
 0x11f   : > { %v546_v37 = vpop.f32.mrb[9].mxu0 }
 0x120   : > { %v1113_v38 = vpop.f32.mrb[10].mxu0 }
 0x121   : > { %v633_v39 = vpack.c.bf16 %v1113_v38, %v1112_v36  ;;  %v549_v40 = vpop.f32.mrb[11].mxu0 }
 0x122   : > { %v632_v41 = vpack.c.bf16 %v549_v40, %v546_v37 }
 0x124   : > { %1142 = vmatprep.mubr.bf16.mxu1 %v632_v41 }
 0x125   : > { %1143 = vmatmul.mubr.bf16.gmra.mrb[8].mxu1 %v633_v39 }
 0x126   : > { %v1116_v42 = vpop.f32.mrb[12].mxu0 }
 0x127   : > { %v562_v43 = vpop.f32.mrb[13].mxu0 }
 0x128   : > { %v1117_v44 = vpop.f32.mrb[14].mxu0 }
 0x129   : > { %v635_v45 = vpack.c.bf16 %v1117_v44, %v1116_v42  ;;  %v565_v46 = vpop.f32.mrb[15].mxu0 }
 0x12a   : > { %v634_v47 = vpack.c.bf16 %v565_v46, %v562_v43 }
 0x12c   : > { %1146 = vmatprep.mubr.bf16.mxu1 %v634_v47 }
 0x12d   : > { %1147 = vmatmul.mubr.bf16.gmra.mrb[12].mxu1 %v635_v45 }
 0x1e8   : > { %v1136_v49 = vpop.f32.mrb[0].mxu1 }
 0x1e9   : > { %v750_v50 = vadd.f32 %v1136_v49, %v1443_v48  ;;  %v741_v51 = vpop.f32.mrb[1].mxu1 }
 0x1ea   : > { %v742_v52 = vadd.f32 %v1443_v48, %v741_v51  ;;  %v1137_v53 = vpop.f32.mrb[2].mxu1 }
 0x1eb   : > { %vm806_vm0 = vcmp.gt.f32.partialorder %v750_v50, 0.0  ;;  %v822_v54 = vmul.f32 0.2, %v750_v50  ;;  %v753_v55 = vadd.f32 %v1137_v53, %v1443_v48  ;;  %v744_v56 = vpop.f32.mrb[3].mxu1 }
 0x1ec   : > { %vm804_vm1 = vcmp.gt.f32.partialorder %v742_v52, 0.0  ;;  %v820_v57 = vmul.f32 0.2, %v742_v52  ;;  %v745_v58 = vadd.f32 %v1443_v48, %v744_v56 }
 0x1ed   : > { %v838_v59 = vsel %vm806_vm0, %v750_v50, %v822_v54  ;;  %vm807_vm2 = vcmp.gt.f32.partialorder %v753_v55, 0.0  ;;  %v823_v60 = vmul.f32 0.2, %v753_v55 }
 0x1ee   : > { %854 = vst [vmem:[%s1451_s29 + $0x10] sm:$0xff] %v838_v59  ;;  %v836_v61 = vsel %vm804_vm1, %v742_v52, %v820_v57  ;;  %vm805_vm3 = vcmp.gt.f32.partialorder %v745_v58, 0.0  ;;  %v821_v62 = vmul.f32 0.2, %v745_v58 }
 0x1ef   : > { %852 = vst [vmem:[%s1451_s29] sm:$0xff] %v836_v61  ;;  %v839_v63 = vsel %vm807_vm2, %v753_v55, %v823_v60 }
 0x1f0   : > { %855 = vst [vmem:[%s1451_s29 + $0x18] sm:$0xff] %v839_v63  ;;  %v837_v0 = vsel %vm805_vm3, %v745_v58, %v821_v62  ;;  %v1140_v1 = vpop.f32.mrb[4].mxu1 }
 0x1f1   : > { %853 = vst [vmem:[%s1451_s29 + $0x8] sm:$0xff] %v837_v0  ;;  %v766_v2 = vadd.f32 %v1140_v1, %v1443_v48  ;;  %v757_v3 = vpop.f32.mrb[5].mxu1 }
 0x1f2   : > { %v758_v4 = vadd.f32 %v1443_v48, %v757_v3  ;;  %v1141_v5 = vpop.f32.mrb[6].mxu1 }
 0x1f3   : > { %vm810_vm4 = vcmp.gt.f32.partialorder %v766_v2, 0.0  ;;  %v826_v6 = vmul.f32 0.2, %v766_v2  ;;  %v769_v7 = vadd.f32 %v1141_v5, %v1443_v48  ;;  %v760_v8 = vpop.f32.mrb[7].mxu1 }
 0x1f4   : > { %vm808_vm5 = vcmp.gt.f32.partialorder %v758_v4, 0.0  ;;  %v824_v9 = vmul.f32 0.2, %v758_v4  ;;  %v761_v10 = vadd.f32 %v1443_v48, %v760_v8 }
 0x1f5   : > { %v842_v11 = vsel %vm810_vm4, %v766_v2, %v826_v6  ;;  %vm811_vm6 = vcmp.gt.f32.partialorder %v769_v7, 0.0  ;;  %v827_v12 = vmul.f32 0.2, %v769_v7 }
 0x1f6   : > { %858 = vst [vmem:[%s1451_s29 + $0x30] sm:$0xff] %v842_v11  ;;  %v840_v13 = vsel %vm808_vm5, %v758_v4, %v824_v9  ;;  %vm809_vm7 = vcmp.gt.f32.partialorder %v761_v10, 0.0  ;;  %v825_v14 = vmul.f32 0.2, %v761_v10 }
 0x1f7   : > { %856 = vst [vmem:[%s1451_s29 + $0x20] sm:$0xff] %v840_v13  ;;  %v843_v15 = vsel %vm811_vm6, %v769_v7, %v827_v12 }
 0x1f8   : > { %859 = vst [vmem:[%s1451_s29 + $0x38] sm:$0xff] %v843_v15  ;;  %v841_v16 = vsel %vm809_vm7, %v761_v10, %v825_v14  ;;  %v1144_v17 = vpop.f32.mrb[8].mxu1 }
 0x1f9   : > { %857 = vst [vmem:[%s1451_s29 + $0x28] sm:$0xff] %v841_v16  ;;  %v782_v18 = vadd.f32 %v1144_v17, %v1443_v48  ;;  %v773_v19 = vpop.f32.mrb[9].mxu1 }
 0x1fa   : > { %v774_v20 = vadd.f32 %v1443_v48, %v773_v19  ;;  %v1145_v21 = vpop.f32.mrb[10].mxu1 }
 0x1fb   : > { %vm814_vm8 = vcmp.gt.f32.partialorder %v782_v18, 0.0  ;;  %v830_v22 = vmul.f32 0.2, %v782_v18  ;;  %v785_v23 = vadd.f32 %v1145_v21, %v1443_v48  ;;  %v776_v24 = vpop.f32.mrb[11].mxu1 }
 0x1fc   : > { %vm812_vm9 = vcmp.gt.f32.partialorder %v774_v20, 0.0  ;;  %v828_v25 = vmul.f32 0.2, %v774_v20  ;;  %v777_v26 = vadd.f32 %v1443_v48, %v776_v24 }
 0x1fd   : > { %v846_v27 = vsel %vm814_vm8, %v782_v18, %v830_v22  ;;  %vm815_vm10 = vcmp.gt.f32.partialorder %v785_v23, 0.0  ;;  %v831_v28 = vmul.f32 0.2, %v785_v23 }
 0x1fe   : > { %862 = vst [vmem:[%s1451_s29 + $0x50] sm:$0xff] %v846_v27  ;;  %v844_v29 = vsel %vm812_vm9, %v774_v20, %v828_v25  ;;  %vm813_vm11 = vcmp.gt.f32.partialorder %v777_v26, 0.0  ;;  %v829_v30 = vmul.f32 0.2, %v777_v26 }
 0x1ff   : > { %860 = vst [vmem:[%s1451_s29 + $0x40] sm:$0xff] %v844_v29  ;;  %v847_v31 = vsel %vm815_vm10, %v785_v23, %v831_v28 }
 0x200   : > { %863 = vst [vmem:[%s1451_s29 + $0x58] sm:$0xff] %v847_v31  ;;  %v845_v32 = vsel %vm813_vm11, %v777_v26, %v829_v30  ;;  %v1148_v33 = vpop.f32.mrb[12].mxu1 }
 0x201   : > { %861 = vst [vmem:[%s1451_s29 + $0x48] sm:$0xff] %v845_v32  ;;  %v798_v34 = vadd.f32 %v1148_v33, %v1443_v48  ;;  %v789_v35 = vpop.f32.mrb[13].mxu1 }
 0x202   : > { %v790_v36 = vadd.f32 %v1443_v48, %v789_v35  ;;  %v1149_v37 = vpop.f32.mrb[14].mxu1 }
 0x203   : > { %vm818_vm12 = vcmp.gt.f32.partialorder %v798_v34, 0.0  ;;  %v834_v38 = vmul.f32 0.2, %v798_v34  ;;  %v801_v39 = vadd.f32 %v1149_v37, %v1443_v48  ;;  %v792_v40 = vpop.f32.mrb[15].mxu1 }
 0x204   : > { %vm816_vm13 = vcmp.gt.f32.partialorder %v790_v36, 0.0  ;;  %v832_v41 = vmul.f32 0.2, %v790_v36  ;;  %v793_v42 = vadd.f32 %v1443_v48, %v792_v40 }
 0x205   : > { %v850_v43 = vsel %vm818_vm12, %v798_v34, %v834_v38  ;;  %vm819_vm14 = vcmp.gt.f32.partialorder %v801_v39, 0.0  ;;  %v835_v44 = vmul.f32 0.2, %v801_v39 }
 0x206   : > { %866 = vst [vmem:[%s1451_s29 + $0x70] sm:$0xff] %v850_v43  ;;  %v848_v45 = vsel %vm816_vm13, %v790_v36, %v832_v41  ;;  %vm817_vm15 = vcmp.gt.f32.partialorder %v793_v42, 0.0  ;;  %v833_v46 = vmul.f32 0.2, %v793_v42 }
 0x207   : > { %864 = vst [vmem:[%s1451_s29 + $0x60] sm:$0xff] %v848_v45  ;;  %v851_v47 = vsel %vm819_vm14, %v801_v39, %v835_v44 }
 0x208   : > { %867 = vst [vmem:[%s1451_s29 + $0x78] sm:$0xff] %v851_v47  ;;  %v849_v48 = vsel %vm817_vm15, %v793_v42, %v833_v46 }
 0x209   : > { %865 = vst [vmem:[%s1451_s29 + $0x68] sm:$0xff] %v849_v48 }
 0x20a   : > { %1244 = shalt.err (!%p1241_p5)
}
 0x20b   : > { %s1245_s13 = scalar_lea.hbm %s1483_s18, 2048  ;;  %s1249_s22 = scalar_lea.hbm %s1542_s4, 4096 }
 0x20c   : > { %p1246_p6 = scmp.ne.s32.totalorder %s1483_s18, %s1245_s13  ;;  %p1250_p10 = scmp.lt.u32.totalorder %s1483_s18, %s1542_s4 }
 0x20d   : > { %p1251_p11 = scmp.lt.u32.totalorder %s1249_s22, %s1245_s13  ;;  %p1253_p13 = scmp.lt.u32.totalorder %s1245_s13, %s1483_s18 }
 0x20e   : > { %p1247_p7 = pnand %p1246_p6, %p1379_p4 }
 0x20f   : > { %p1252_p12 = por %p1251_p11, %p1250_p10 }
 0x210   : > { %p1248_p9 = pneg %p1247_p7 }
 0x211   : > { %p1254_p0 = por %p1253_p13, %p1252_p12 }
 0x213   : > { %p1255_p1 = pnand %p1254_p0, %p1248_p9 }
 0x215   : > { %1258 = shalt.err (!%p1255_p1)
}
 0x216   : > { %s1312_s29 = smov 128   ;;  %s1313_s30 = smov 8  }
 0x217   : > { %1150 = dma.vmem_to_hbm [thread:$0]  (%p1379_p4), %s1485_s5, 2048, %s1483_s18, %s1492_s8, %s1312_s29, %s1312_s29, %s1313_s30  }
 0x218 PF: > { %p1156_p2 = scmp.ge.s32.totalorder %s1309_s20, 2  ;;  %s899_s6 = sand.u32 1, %s1289_s15  }
 0x219   : > { %s900_s7 = scalar_lea.sflag [#allocation4], %s899_s6 }
 0x21a   : > { %p1153_p3 = pnand %p1156_p2, %p1386_p8 }
 0x21c   : > { %1284 = dma.done.wait (!%p1153_p3), %s900_s7, 2048  }
 0x21d   : > { %1286 = vsyncadd (!%p1153_p3), %s900_s7, 4294965248  ;;  %s17_s20 = sadd.s32 1, %s1309_s20   ;;  %s1545_s15 = smov %s1293_s16 }
 0x21e   : > { %p14_p5 = scmp.ge.s32.totalorder %s17_s20, 4   ;;  %s1546_s16 = smov %s1297_s17 }
 0x21f   : > { %s1547_s17 = smov %s1392_s28  ;;  %s1548_s18 = smov %s1305_s19 }
 0x220   : > { %s1549_s19 = smov %s1551_s23  ;;  %16 = sbr.rel (!%p14_p5) target bundleno = 4 (0x4), region = 88 }
 0x227   :  { %905 = vsyncpa [#allocation4], 1 }
 0x228   :  { %907 = vsyncpa [#allocation4 + $0x1], 1 }

// kernel: gcn_forward_padded.2
= control target key start
LH: loop header
LB: loop body
LE: loop exit
PB: predicated region body
PF: predicated region fallthrough
CT: control target
= control target key end

     0   :  { %9 = vsyncpa [#allocation4], 0  ;;  %s1896_s0 = inlined_call_operand.hbm [shape: bf16[2,128,128], index: 0, kind: input, shape index: {}]   ;;  %s1897_s1 = inlined_call_operand.hbm [shape: bf16[2,128,128], index: 1, kind: input, shape index: {}]   ;;  %s1898_s2 = inlined_call_operand.hbm [shape: bf16[2,128,128], index: 2, kind: input, shape index: {}]   ;;  %s1899_s3 = inlined_call_operand.vmem [shape: f32[2,1,128], index: 3, kind: input, shape index: {}]   ;;  %s1900_s4 = inlined_call_operand.vmem [shape: bf16[2,128,128], index: 4, kind: output, shape index: {}]  }
   0x1   :  { %11 = vsyncpa [#allocation4 + $0x1], 0 }
   0x2   :  { %12 = vsyncpa [#allocation6], 0 }
   0x3   :  { %14 = vsyncpa [#allocation6 + $0x1], 0  ;;  %s1615_s15 = smov 0   ;;  %s1617_s16 = smov 0  }
   0x4   :  { %s1619_s17 = smov 0   ;;  %s1621_s18 = smov 0  }
   0x5   :  { %s1623_s19 = smov 0   ;;  %s1625_s20 = smov 0  }
   0x6 LB: > { %s1902_s21 = sadd.s32 4294967295, %s1583_s20   ;;  %s39_s22 = sadd.s32 1, %s1579_s19  ;;  %s1583_s20 = sphi %s1625_s20, %s20_s20   ;;  %s1579_s19 = sphi %s1623_s19, %s1918_s19   ;;  %s1575_s18 = sphi %s1621_s18, %s1917_s18   ;;  %s1571_s17 = sphi %s1619_s17, %s1916_s17   ;;  %s1567_s16 = sphi %s1617_s16, %s1915_s16   ;;  %s1563_s15 = sphi %s1615_s15, %s1914_s15  }
   0x7   : > { %p41_p0 = scmp.ge.s32.totalorder %s39_s22, 2  ;;  %s50_s23 = sadd.s32 1, %s1571_s17 }
   0x8   : > { %p57_p1 = scmp.ne.s32.totalorder %s1571_s17, %s1567_s16  ;;  %p58_p2 = scmp.eq.s32.totalorder %s1583_s20, 0 }
   0x9   : > { %s1920_s22 = smov (%p41_p0, %s39_s22), 0  ;;  %p63_p4 = scmp.ne.s32.totalorder %s1567_s16, %s1563_s15 }
   0xa   : > { %p59_p3 = por %p58_p2, %p57_p1  ;;  %s43_s24 = ssub.s32 %s1579_s19, %s1920_s22 }
   0xb   : > { %p64_p5 = scmp.eq.s32.totalorder %s1902_s21, 0  ;;  %p48_p6 = scmp.eq.s32.totalorder %s43_s24, 0 }
   0xc   : > { %p1364_p8 = scmp.lt.s32.totalorder %s1583_s20, 2  ;;  %s195_s27 = sand.u32 1, %s1571_s17  }
   0xd   : > { %p1656_p7 = por %p64_p5, %p63_p4  ;;  %s1666_s28 = sshll.u32 %s1579_s19, 10 }
   0xe   : > { %s1662_s26 = scalar_select %p48_p6, %s1571_s17, %s50_s23  }
   0xf   : > { %s1905_s25 = scalar_select %p1656_p7, 1, 0 }
  0x10   : > { %s1670_s29 = sshll.u32 %s195_s27, 6  ;;  %p1672_p9 = pnand %p1364_p8, %p59_p3 }
  0x11   : > { %s219_s5 = sand.u32 1, %s1583_s20   ;;  %s1681_s8 = scalar_lea.hbm %s1897_s1, %s1666_s28 }
  0x12   : > { %s223_s9 = scalar_lea.vmem [#allocation5], %s1670_s29  ;;  %s1687_s11 = scalar_lea.sflag [#allocation6], %s219_s5 }
  0x13   : > { %s232_s10 = sshll.u32 %s223_s9, 4  ;;  %s1439_s12 = scalar_lea.hbm %s1681_s8, 1024  ;;  %s1684_s10 = int_to_ptr.vmem [resolvable:$true] %s232_s10 }
  0x14   : > { %p1440_p11 = scmp.ne.s32.totalorder %s1681_s8, %s1439_s12  ;;  %p1693_p12 = pneg %p1672_p9 }
  0x15   : > { %s1444_s23 = scalar_lea.hbm %s1897_s1, 2048  ;;  %p1445_p1 = scmp.lt.u32.totalorder %s1681_s8, %s1897_s1 }
  0x16   : > { %p1442_p13 = pnand %p1693_p12, %p1440_p11  ;;  %p1446_p2 = scmp.lt.u32.totalorder %s1444_s23, %s1439_s12 }
  0x17   : > { %p1448_p4 = scmp.lt.u32.totalorder %s1439_s12, %s1681_s8 }
  0x18   : > { %p1443_p0 = pneg %p1442_p13  ;;  %p1447_p3 = por %p1446_p2, %p1445_p1 }
  0x1a   : > { %p1449_p5 = por %p1448_p4, %p1447_p3 }
  0x1c   : > { %p1450_p6 = pnand %p1449_p5, %p1443_p0 }
  0x1e   : > { %1453 = shalt.err (!%p1450_p6)
}
  0x1f   : > { %s1454_s5 = scalar_lea.vmem %s1684_s10, 1024  ;;  %s1585_s7 = smov [#allocation5]  }
  0x20   : > { %p1455_p8 = scmp.ne.s32.totalorder %s1684_s10, %s1454_s5  ;;  %s1459_s9 = sshll.u32 %s1585_s7, 4  ;;  %s1460_s9 = int_to_ptr.vmem [resolvable:$false] %s1459_s9 }
  0x21   : > { %s1461_s14 = scalar_lea.vmem %s1460_s9, 2048  ;;  %p1462_p10 = scmp.lt.s32.totalorder %s1684_s10, %s1460_s9 }
  0x22   : > { %p1457_p11 = pnand %p1455_p8, %p1693_p12  ;;  %p1463_p7 = scmp.lt.s32.totalorder %s1461_s14, %s1454_s5 }
  0x24   : > { %p1458_p13 = pneg %p1457_p11  ;;  %p1464_p1 = por %p1463_p7, %p1462_p10 }
  0x26   : > { %p1465_p2 = pnand %p1464_p1, %p1458_p13 }
  0x28   : > { %1468 = shalt.err (!%p1465_p2)
}
  0x29   : > { %s1903_s12 = smov 64   ;;  %s1587_s15 = smov 4  }
  0x2a   : > { %1360 = dma.hbm_to_vmem [thread:$0]  (!%p1672_p9), %s1681_s8, 1024, %s1684_s10, %s1687_s11, %s1903_s12, %s1903_s12, %s1587_s15  }
  0x2b   : > { %p267_p7 = scmp.lt.s32.totalorder %s1583_s20, 3  ;;  %p1908_p10 = scmp.ge.s32.totalorder %s1583_s20, 1 }
  0x2c   : > { %s1731_s5 = scalar_lea.hbm %s1896_s0, %s1666_s28  ;;  %s199_s7 = scalar_lea.vmem [#allocation3], %s1670_s29 }
  0x2d   : > { %p1723_p0 = pnand %p1908_p10, %p267_p7  ;;  %s209_s9 = sshll.u32 %s199_s7, 4  ;;  %s1734_s9 = int_to_ptr.vmem [resolvable:$true] %s209_s9 }
  0x2e   : > { %s1738_s8 = scalar_lea.sflag [#allocation4], %s195_s27  ;;  %s1469_s10 = scalar_lea.hbm %s1731_s5, 1024 }
  0x2f   : > { %s1909_s23 = scalar_select %p1723_p0, 1, 0 }
  0x30   : > { %p1470_p3 = scmp.ne.s32.totalorder %s1731_s5, %s1469_s10  ;;  %s1474_s6 = scalar_lea.hbm %s1896_s0, 2048 }
  0x31   : > { %p1475_p6 = scmp.lt.u32.totalorder %s1731_s5, %s1896_s0  ;;  %p1476_p8 = scmp.lt.u32.totalorder %s1474_s6, %s1469_s10 }
  0x32   : > { %p1472_p4 = pnand %p1470_p3, %p1693_p12  ;;  %p1478_p13 = scmp.lt.u32.totalorder %s1469_s10, %s1731_s5 }
  0x33   : > { %p1477_p11 = por %p1476_p8, %p1475_p6 }
  0x34   : > { %p1473_p5 = pneg %p1472_p4 }
  0x35   : > { %p1479_p1 = por %p1478_p13, %p1477_p11 }
  0x37   : > { %p1480_p2 = pnand %p1479_p1, %p1473_p5 }
  0x39   : > { %1483 = shalt.err (!%p1480_p2)
}
  0x3a   : > { %s1484_s27 = scalar_lea.vmem %s1734_s9, 1024  ;;  %s1588_s7 = smov [#allocation3]  }
  0x3b   : > { %p1485_p7 = scmp.ne.s32.totalorder %s1734_s9, %s1484_s27  ;;  %s1489_s14 = sshll.u32 %s1588_s7, 4  ;;  %s1490_s14 = int_to_ptr.vmem [resolvable:$false] %s1489_s14 }
  0x3c   : > { %s1491_s21 = scalar_lea.vmem %s1490_s14, 2048  ;;  %p1492_p4 = scmp.lt.s32.totalorder %s1734_s9, %s1490_s14 }
  0x3d   : > { %p1487_p10 = pnand %p1485_p7, %p1693_p12  ;;  %p1493_p0 = scmp.lt.s32.totalorder %s1491_s21, %s1484_s27 }
  0x3f   : > { %p1488_p3 = pneg %p1487_p10  ;;  %p1494_p6 = por %p1493_p0, %p1492_p4 }
  0x41   : > { %p1495_p8 = pnand %p1494_p6, %p1488_p3 }
  0x43   : > { %1498 = shalt.err (!%p1495_p8)
}
  0x44   : > { %s1910_s12 = smov 64   ;;  %s1769_s6 = scalar_lea.hbm %s1898_s2, %s1666_s28 }
  0x45   : > { %1357 = dma.hbm_to_vmem [thread:$0]  (!%p1672_p9), %s1731_s5, 1024, %s1734_s9, %s1738_s8, %s1910_s12, %s1910_s12, %s1587_s15  }
  0x46   : > { %s246_s27 = scalar_lea.vmem [#allocation7], %s1670_s29  ;;  %s1499_s14 = scalar_lea.hbm %s1769_s6, 1024 }
  0x47   : > { %s253_s7 = sshll.u32 %s246_s27, 4  ;;  %p1500_p0 = scmp.ne.s32.totalorder %s1769_s6, %s1499_s14  ;;  %s1772_s7 = int_to_ptr.vmem [resolvable:$true] %s253_s7 }
  0x48   : > { %s1504_s9 = scalar_lea.hbm %s1898_s2, 2048  ;;  %p1505_p13 = scmp.lt.u32.totalorder %s1769_s6, %s1898_s2 }
  0x49   : > { %p1502_p5 = pnand %p1500_p0, %p1693_p12  ;;  %p1506_p1 = scmp.lt.u32.totalorder %s1504_s9, %s1499_s14 }
  0x4a   : > { %p1508_p7 = scmp.lt.u32.totalorder %s1499_s14, %s1769_s6 }
  0x4b   : > { %p1503_p11 = pneg %p1502_p5  ;;  %p1507_p2 = por %p1506_p1, %p1505_p13 }
  0x4d   : > { %p1509_p10 = por %p1508_p7, %p1507_p2 }
  0x4f   : > { %p1510_p3 = pnand %p1509_p10, %p1503_p11 }
  0x51   : > { %1513 = shalt.err (!%p1510_p3)
}
  0x52   : > { %s1514_s29 = scalar_lea.vmem %s1772_s7, 1024  ;;  %s1589_s10 = smov [#allocation7]  }
  0x53   : > { %p1515_p4 = scmp.ne.s32.totalorder %s1772_s7, %s1514_s29  ;;  %s1519_s24 = sshll.u32 %s1589_s10, 4  ;;  %s1520_s24 = int_to_ptr.vmem [resolvable:$false] %s1519_s24 }
  0x54   : > { %s1521_s27 = scalar_lea.vmem %s1520_s24, 2048  ;;  %p1522_p0 = scmp.lt.s32.totalorder %s1772_s7, %s1520_s24 }
  0x55   : > { %p1517_p6 = pnand %p1515_p4, %p1693_p12  ;;  %p1523_p5 = scmp.lt.s32.totalorder %s1521_s27, %s1514_s29 }
  0x57   : > { %p1518_p8 = pneg %p1517_p6  ;;  %p1524_p13 = por %p1523_p5, %p1522_p0 }
  0x59   : > { %p1525_p1 = pnand %p1524_p13, %p1518_p8 }
  0x5b   : > { %1528 = shalt.err (!%p1525_p1)
}
  0x5c   : > { %1363 = dma.hbm_to_vmem [thread:$0]  (!%p1672_p9), %s1769_s6, 1024, %s1772_s7, %s1687_s11, %s1910_s12, %s1910_s12, %s1587_s15  }
  0x5d   : > { %p1911_p12 = scmp.ne.s32.totalorder %s1909_s23, 0 }
  0x5e   : > { %s273_s13 = sand.u32 (!%p1911_p12), 1, %s1567_s16   ;;  %p1912_p11 = scmp.ne.s32.totalorder (!%p1911_p12), %s1905_s25, 0 }
  0x5f   : > { %271 = sbr.rel (%p1911_p12) target bundleno = 605 (0x25d), region = 36  ;;  %s1137_s14 = sshll.u32 (!%p1911_p12), %s273_s13, 6 }
  0x60   : > { %s274_s21 = scalar_lea.sflag (!%p1911_p12), [#allocation4], %s273_s13  ;;  %s1802_s5 = scalar_lea.vmem (!%p1911_p12), [#allocation3], %s1137_s14 }
  0x66   : > { %1554 = dma.done.wait (%p1912_p11), %s274_s21, 1024  }
  0x67   : > { %1556 = vsyncadd (%p1912_p11), %s274_s21, 4294966272  ;;  %s1913_s30 = sadd.s32 4294967295, %s1583_s20   ;;  %s1810_s15 = scalar_lea.vmem [#allocation5], %s1137_s14 }
  0x68   : > { %s282_s9 = sand.u32 1, %s1913_s30  }
  0x69   : > { %s283_s11 = scalar_lea.sflag [#allocation6], %s282_s9 }
  0x6a   : > { %1558 = dma.done.wait (%p1912_p11), %s283_s11, 2048  }
  0x6b   : > { %1560 = vsyncadd (%p1912_p11), %s283_s11, 4294965248  ;;  %v1415_v0 = vld [vmem:[%s1810_s15] sm:$0xff]   ;;  %v1416_v1 = vld [vmem:[%s1810_s15 + $0x8] sm:$0xff]   ;;  %s1823_s25 = scalar_lea.vmem [#allocation7], %s1137_s14  ;;  %p339_p9 = scmp.lt.s32.totalorder %s1575_s18, 1 }
  0x6c   : > { %1284 = vmatprep.subr.bf16.mxu0 %v1415_v0  ;;  %v1417_v2 = vld [vmem:[%s1810_s15 + $0x10] sm:$0xff]   ;;  %v1418_v3 = vld [vmem:[%s1810_s15 + $0x18] sm:$0xff]   ;;  %v1423_v4 = vld [vmem:[%s1802_s5] sm:$0xff]  }
  0x6d   : > { %1285 = vmatpush3.bf16.msra.mxu0 %v1415_v0  ;;  %1300 = vmatprep.mubr.bf16.mxu0 %v1423_v4  ;;  %v1419_v5 = vld [vmem:[%s1810_s15 + $0x20] sm:$0xff]   ;;  %v1420_v6 = vld [vmem:[%s1810_s15 + $0x28] sm:$0xff]   ;;  %v1421_v9 = vld [vmem:[%s1810_s15 + $0x30] sm:$0xff]   ;;  %s1922_s18 = smov (!%p339_p9, %s1575_s18), 1 }
  0x6e   : > { %1286 = vmatprep.subr.bf16.mxu0 %v1416_v1  ;;  %v1431_v7 = vld [vmem:[%s1823_s25] sm:$0xff]   ;;  %v1432_v8 = vld [vmem:[%s1823_s25 + $0x8] sm:$0xff]   ;;  %v1433_v10 = vld [vmem:[%s1823_s25 + $0x10] sm:$0xff]   ;;  %s341_s6 = scalar_lea.vmem %s1899_s3, %s1922_s18  ;;  %s1188_s7 = sshll.u32 %s1922_s18, 6 }
  0x6f   : > { %1316 = vmatprep.subr.bf16.mxu1 %v1431_v7  ;;  %v1422_v11 = vld [vmem:[%s1810_s15 + $0x38] sm:$0xff]   ;;  %v1435_v13 = vld [vmem:[%s1823_s25 + $0x20] sm:$0xff]   ;;  %v1424_v14 = vld [vmem:[%s1802_s5 + $0x8] sm:$0xff]   ;;  %s1856_s29 = scalar_lea.vmem %s1900_s4, %s1188_s7 }
  0x70   : > { %1317 = vmatpush3.bf16.msra.mxu1 %v1431_v7  ;;  %v1434_v12 = vld [vmem:[%s1823_s25 + $0x18] sm:$0xff]   ;;  %v1425_v15 = vld [vmem:[%s1802_s5 + $0x10] sm:$0xff]   ;;  %v1436_v16 = vld [vmem:[%s1823_s25 + $0x28] sm:$0xff]  }
  0x71   : > { %1287 = vmatpush3.bf16.msra.mxu0 %v1416_v1  ;;  %1318 = vmatprep.subr.bf16.mxu1 %v1432_v8  ;;  %v1437_v17 = vld [vmem:[%s1823_s25 + $0x30] sm:$0xff]   ;;  %v1426_v18 = vld [vmem:[%s1802_s5 + $0x18] sm:$0xff]   ;;  %v1427_v19 = vld [vmem:[%s1802_s5 + $0x20] sm:$0xff]  }
  0x72   : > { %1288 = vmatprep.subr.bf16.mxu0 %v1417_v2  ;;  %v1428_v20 = vld [vmem:[%s1802_s5 + $0x28] sm:$0xff]   ;;  %v1429_v21 = vld [vmem:[%s1802_s5 + $0x30] sm:$0xff]   ;;  %v1430_v22 = vld [vmem:[%s1802_s5 + $0x38] sm:$0xff]  }
  0x73   : > { %v1438_v23 = vld [vmem:[%s1823_s25 + $0x38] sm:$0xff]   ;;  %v1847_v48 = vld [vmem:[%s341_s6] ss:$0 sm:$0xff] }
  0x74   : > { %1319 = vmatpush3.bf16.msra.mxu1 %v1432_v8 }
  0x75   : > { %1289 = vmatpush3.bf16.msra.mxu0 %v1417_v2  ;;  %1320 = vmatprep.subr.bf16.mxu1 %v1433_v10 }
  0x76   : > { %1290 = vmatprep.subr.bf16.mxu0 %v1418_v3 }
  0x78   : > { %1321 = vmatpush3.bf16.msra.mxu1 %v1433_v10 }
  0x79   : > { %1291 = vmatpush3.bf16.msra.mxu0 %v1418_v3  ;;  %1322 = vmatprep.subr.bf16.mxu1 %v1434_v12 }
  0x7a   : > { %1292 = vmatprep.subr.bf16.mxu0 %v1419_v5 }
  0x7c   : > { %1323 = vmatpush3.bf16.msra.mxu1 %v1434_v12 }
  0x7d   : > { %1293 = vmatpush3.bf16.msra.mxu0 %v1419_v5  ;;  %1324 = vmatprep.subr.bf16.mxu1 %v1435_v13 }
  0x7e   : > { %1294 = vmatprep.subr.bf16.mxu0 %v1420_v6 }
  0x80   : > { %1325 = vmatpush3.bf16.msra.mxu1 %v1435_v13 }
  0x81   : > { %1295 = vmatpush3.bf16.msra.mxu0 %v1420_v6  ;;  %1326 = vmatprep.subr.bf16.mxu1 %v1436_v16 }
  0x82   : > { %1296 = vmatprep.subr.bf16.mxu0 %v1421_v9 }
  0x84   : > { %1327 = vmatpush3.bf16.msra.mxu1 %v1436_v16 }
  0x85   : > { %1297 = vmatpush3.bf16.msra.mxu0 %v1421_v9  ;;  %1328 = vmatprep.subr.bf16.mxu1 %v1437_v17 }
  0x86   : > { %1298 = vmatprep.subr.bf16.mxu0 %v1422_v11 }
  0x88   : > { %1329 = vmatpush3.bf16.msra.mxu1 %v1437_v17 }
  0x89   : > { %1299 = vmatpush3.bf16.msra.mxu0 %v1422_v11  ;;  %1330 = vmatprep.subr.bf16.mxu1 %v1438_v23 }
  0x8c   : > { %1301 = vmatmul.mubr.bf16.vlgmr.msra.gmra.mrb[0].mxu0 %v1424_v14  ;;  %1331 = vmatpush3.bf16.msra.mxu1 %v1438_v23 }
  0x8d   : > { %1304 = vmatprep.mubr.bf16.mxu0 %v1425_v15 }
  0x94   : > { %1305 = vmatmul.mubr.bf16.gmra.mrb[4].mxu0 %v1426_v18 }
  0x95   : > { %1308 = vmatprep.mubr.bf16.mxu0 %v1427_v19 }
  0x9c   : > { %1309 = vmatmul.mubr.bf16.gmra.mrb[8].mxu0 %v1428_v20 }
  0x9d   : > { %1312 = vmatprep.mubr.bf16.mxu0 %v1429_v21 }
  0xa4   : > { %1313 = vmatmul.mubr.bf16.gmra.mrb[12].mxu0 %v1430_v22 }
 0x15f   : > { %v1302_v24 = vpop.f32.mrb[0].mxu0 }
 0x160   : > { %v551_v25 = vpop.f32.mrb[1].mxu0 }
 0x161   : > { %v1303_v26 = vpop.f32.mrb[2].mxu0 }
 0x162   : > { %v666_v27 = vpack.c.bf16 %v1303_v26, %v1302_v24  ;;  %v554_v28 = vpop.f32.mrb[3].mxu0 }
 0x163   : > { %v665_v29 = vpack.c.bf16 %v554_v28, %v551_v25 }
 0x165   : > { %1332 = vmatprep.mubr.bf16.mxu1 %v665_v29 }
 0x166   : > { %1333 = vmatmul.mubr.bf16.vlgmr.msra.gmra.mrb[0].mxu1 %v666_v27 }
 0x167   : > { %v1306_v30 = vpop.f32.mrb[4].mxu0 }
 0x168   : > { %v567_v31 = vpop.f32.mrb[5].mxu0 }
 0x169   : > { %v1307_v32 = vpop.f32.mrb[6].mxu0 }
 0x16a   : > { %v668_v33 = vpack.c.bf16 %v1307_v32, %v1306_v30  ;;  %v570_v34 = vpop.f32.mrb[7].mxu0 }
 0x16b   : > { %v667_v35 = vpack.c.bf16 %v570_v34, %v567_v31 }
 0x16d   : > { %1336 = vmatprep.mubr.bf16.mxu1 %v667_v35 }
 0x16e   : > { %1337 = vmatmul.mubr.bf16.gmra.mrb[4].mxu1 %v668_v33 }
 0x16f   : > { %v1310_v36 = vpop.f32.mrb[8].mxu0 }
 0x170   : > { %v583_v37 = vpop.f32.mrb[9].mxu0 }
 0x171   : > { %v1311_v38 = vpop.f32.mrb[10].mxu0 }
 0x172   : > { %v670_v39 = vpack.c.bf16 %v1311_v38, %v1310_v36  ;;  %v586_v40 = vpop.f32.mrb[11].mxu0 }
 0x173   : > { %v669_v41 = vpack.c.bf16 %v586_v40, %v583_v37 }
 0x175   : > { %1340 = vmatprep.mubr.bf16.mxu1 %v669_v41 }
 0x176   : > { %1341 = vmatmul.mubr.bf16.gmra.mrb[8].mxu1 %v670_v39 }
 0x177   : > { %v1314_v42 = vpop.f32.mrb[12].mxu0 }
 0x178   : > { %v599_v43 = vpop.f32.mrb[13].mxu0 }
 0x179   : > { %v1315_v44 = vpop.f32.mrb[14].mxu0 }
 0x17a   : > { %v672_v45 = vpack.c.bf16 %v1315_v44, %v1314_v42  ;;  %v602_v46 = vpop.f32.mrb[15].mxu0 }
 0x17b   : > { %v671_v47 = vpack.c.bf16 %v602_v46, %v599_v43 }
 0x17d   : > { %1344 = vmatprep.mubr.bf16.mxu1 %v671_v47 }
 0x17e   : > { %1345 = vmatmul.mubr.bf16.gmra.mrb[12].mxu1 %v672_v45 }
 0x239   : > { %v1334_v49 = vpop.f32.mrb[0].mxu1 }
 0x23a   : > { %v787_v50 = vadd.f32 %v1334_v49, %v1847_v48  ;;  %v778_v51 = vpop.f32.mrb[1].mxu1 }
 0x23b   : > { %v779_v52 = vadd.f32 %v1847_v48, %v778_v51  ;;  %v1335_v53 = vpop.f32.mrb[2].mxu1 }
 0x23c   : > { %v859_v54 = vmul.f32 0.2, %v787_v50  ;;  %v790_v55 = vadd.f32 %v1335_v53, %v1847_v48  ;;  %v781_v56 = vpop.f32.mrb[3].mxu1  ;;  %vm843_vm0 = vcmp.gt.f32.partialorder %v787_v50, 0.0 }
 0x23d   : > { %v857_v57 = vmul.f32 0.2, %v779_v52  ;;  %v782_v58 = vadd.f32 %v1847_v48, %v781_v56  ;;  %vm841_vm1 = vcmp.gt.f32.partialorder %v779_v52, 0.0 }
 0x23e   : > { %vm844_vm2 = vcmp.gt.f32.partialorder %v790_v55, 0.0  ;;  %v860_v59 = vmul.f32 0.2, %v790_v55  ;;  %v875_v61 = vsel %vm843_vm0, %v787_v50, %v859_v54 }
 0x23f   : > { %vm842_vm3 = vcmp.gt.f32.partialorder %v782_v58, 0.0  ;;  %v858_v60 = vmul.f32 0.2, %v782_v58  ;;  %v873_v63 = vsel %vm841_vm1, %v779_v52, %v857_v57 }
 0x240   : > { %v876_v62 = vsel %vm844_vm2, %v790_v55, %v860_v59 }
 0x241   : > { %v1213_v0 = vpack.c.bf16 %v876_v62, %v875_v61  ;;  %v874_v1 = vsel %vm842_vm3, %v782_v58, %v858_v60  ;;  %v1338_v2 = vpop.f32.mrb[4].mxu1 }
 0x242   : > { %v1208_v3 = vpack.c.bf16 %v874_v1, %v873_v63  ;;  %v803_v4 = vadd.f32 %v1338_v2, %v1847_v48  ;;  %v794_v5 = vpop.f32.mrb[5].mxu1 }
 0x243   : > { %1245 = vst [vmem:[%s1856_s29 + $0x8] sm:$0xff] %v1213_v0   ;;  %v795_v6 = vadd.f32 %v1847_v48, %v794_v5  ;;  %v1339_v7 = vpop.f32.mrb[6].mxu1 }
 0x244   : > { %1209 = vst [vmem:[%s1856_s29] sm:$0xff] %v1208_v3   ;;  %v863_v8 = vmul.f32 0.2, %v803_v4  ;;  %v806_v9 = vadd.f32 %v1339_v7, %v1847_v48  ;;  %v797_v10 = vpop.f32.mrb[7].mxu1  ;;  %vm847_vm4 = vcmp.gt.f32.partialorder %v803_v4, 0.0 }
 0x245   : > { %v861_v11 = vmul.f32 0.2, %v795_v6  ;;  %v798_v12 = vadd.f32 %v1847_v48, %v797_v10  ;;  %vm845_vm5 = vcmp.gt.f32.partialorder %v795_v6, 0.0 }
 0x246   : > { %vm848_vm6 = vcmp.gt.f32.partialorder %v806_v9, 0.0  ;;  %v864_v13 = vmul.f32 0.2, %v806_v9  ;;  %v879_v15 = vsel %vm847_vm4, %v803_v4, %v863_v8 }
 0x247   : > { %vm846_vm7 = vcmp.gt.f32.partialorder %v798_v12, 0.0  ;;  %v862_v14 = vmul.f32 0.2, %v798_v12  ;;  %v877_v17 = vsel %vm845_vm5, %v795_v6, %v861_v11 }
 0x248   : > { %v880_v16 = vsel %vm848_vm6, %v806_v9, %v864_v13 }
 0x249   : > { %v1223_v18 = vpack.c.bf16 %v880_v16, %v879_v15  ;;  %v878_v19 = vsel %vm846_vm7, %v798_v12, %v862_v14  ;;  %v1342_v20 = vpop.f32.mrb[8].mxu1 }
 0x24a   : > { %v1218_v21 = vpack.c.bf16 %v878_v19, %v877_v17  ;;  %v819_v22 = vadd.f32 %v1342_v20, %v1847_v48  ;;  %v810_v23 = vpop.f32.mrb[9].mxu1 }
 0x24b   : > { %1247 = vst [vmem:[%s1856_s29 + $0x18] sm:$0xff] %v1223_v18   ;;  %v811_v24 = vadd.f32 %v1847_v48, %v810_v23  ;;  %v1343_v25 = vpop.f32.mrb[10].mxu1 }
 0x24c   : > { %1246 = vst [vmem:[%s1856_s29 + $0x10] sm:$0xff] %v1218_v21   ;;  %v867_v26 = vmul.f32 0.2, %v819_v22  ;;  %v822_v27 = vadd.f32 %v1343_v25, %v1847_v48  ;;  %v813_v28 = vpop.f32.mrb[11].mxu1  ;;  %vm851_vm8 = vcmp.gt.f32.partialorder %v819_v22, 0.0 }
 0x24d   : > { %v865_v29 = vmul.f32 0.2, %v811_v24  ;;  %v814_v30 = vadd.f32 %v1847_v48, %v813_v28  ;;  %vm849_vm9 = vcmp.gt.f32.partialorder %v811_v24, 0.0 }
 0x24e   : > { %vm852_vm10 = vcmp.gt.f32.partialorder %v822_v27, 0.0  ;;  %v868_v31 = vmul.f32 0.2, %v822_v27  ;;  %v883_v33 = vsel %vm851_vm8, %v819_v22, %v867_v26 }
 0x24f   : > { %vm850_vm11 = vcmp.gt.f32.partialorder %v814_v30, 0.0  ;;  %v866_v32 = vmul.f32 0.2, %v814_v30  ;;  %v881_v35 = vsel %vm849_vm9, %v811_v24, %v865_v29 }
 0x250   : > { %v884_v34 = vsel %vm852_vm10, %v822_v27, %v868_v31 }
 0x251   : > { %v1233_v36 = vpack.c.bf16 %v884_v34, %v883_v33  ;;  %v882_v37 = vsel %vm850_vm11, %v814_v30, %v866_v32  ;;  %v1346_v38 = vpop.f32.mrb[12].mxu1 }
 0x252   : > { %v1228_v39 = vpack.c.bf16 %v882_v37, %v881_v35  ;;  %v835_v40 = vadd.f32 %v1346_v38, %v1847_v48  ;;  %v826_v41 = vpop.f32.mrb[13].mxu1 }
 0x253   : > { %1249 = vst [vmem:[%s1856_s29 + $0x28] sm:$0xff] %v1233_v36   ;;  %v827_v42 = vadd.f32 %v1847_v48, %v826_v41  ;;  %v1347_v43 = vpop.f32.mrb[14].mxu1 }
 0x254   : > { %1248 = vst [vmem:[%s1856_s29 + $0x20] sm:$0xff] %v1228_v39   ;;  %v871_v44 = vmul.f32 0.2, %v835_v40  ;;  %v838_v45 = vadd.f32 %v1347_v43, %v1847_v48  ;;  %v829_v46 = vpop.f32.mrb[15].mxu1  ;;  %vm855_vm12 = vcmp.gt.f32.partialorder %v835_v40, 0.0 }
 0x255   : > { %v869_v47 = vmul.f32 0.2, %v827_v42  ;;  %v830_v49 = vadd.f32 %v1847_v48, %v829_v46  ;;  %vm853_vm13 = vcmp.gt.f32.partialorder %v827_v42, 0.0 }
 0x256   : > { %vm856_vm14 = vcmp.gt.f32.partialorder %v838_v45, 0.0  ;;  %v872_v50 = vmul.f32 0.2, %v838_v45  ;;  %v887_v52 = vsel %vm855_vm12, %v835_v40, %v871_v44 }
 0x257   : > { %vm854_vm15 = vcmp.gt.f32.partialorder %v830_v49, 0.0  ;;  %v870_v51 = vmul.f32 0.2, %v830_v49  ;;  %v885_v54 = vsel %vm853_vm13, %v827_v42, %v869_v47 }
 0x258   : > { %v888_v53 = vsel %vm856_vm14, %v838_v45, %v872_v50 }
 0x259   : > { %v1243_v55 = vpack.c.bf16 %v888_v53, %v887_v52  ;;  %v886_v56 = vsel %vm854_vm15, %v830_v49, %v870_v51 }
 0x25a   : > { %v1238_v57 = vpack.c.bf16 %v886_v56, %v885_v54 }
 0x25b   : > { %1251 = vst [vmem:[%s1856_s29 + $0x38] sm:$0xff] %v1243_v55  }
 0x25c   : > { %1250 = vst [vmem:[%s1856_s29 + $0x30] sm:$0xff] %v1238_v57  }
 0x25d PF: > { %s20_s20 = sadd.s32 1, %s1583_s20   ;;  %s1914_s15 = smov %s1567_s16 }
 0x25e   : > { %p17_p2 = scmp.ge.s32.totalorder %s20_s20, 4   ;;  %s1915_s16 = smov %s1571_s17 }
 0x25f   : > { %s1916_s17 = smov %s1662_s26  ;;  %s1917_s18 = smov %s1579_s19 }
 0x260   : > { %s1918_s19 = smov %s1920_s22  ;;  %19 = sbr.rel (!%p17_p2) target bundleno = 6 (0x6), region = 111 }
 0x267   :  { %999 = vsyncpa [#allocation4], 1 }
 0x268   :  { %1001 = vsyncpa [#allocation4 + $0x1], 1 }
 0x269   :  { %1002 = vsyncpa [#allocation6], 1 }
 0x26a   :  { %1004 = vsyncpa [#allocation6 + $0x1], 1 }

</bundles_post_ra>
